<compile_context>
chip_gen: v7x
topology: tpu7x:2x2x1
jax: 0.10.0
libtpu: 0.0.40
codegen_flags: <defaults>
</compile_context>

<pallas_src>
import functools

import jax
import jax.numpy as jnp
from jax import lax
from jax.experimental import pallas as pl
from jax.experimental.pallas import tpu as pltpu

BATCH = 16  # fixed inside the PyTorch forward()


def _forward_kernel(thr_ref, x_ref, df_ref, wb_ref, w1_ref, b1_ref, w2_ref,
                    b2_ref, loss_ref, *, classes):
    # ---- MLP: Linear -> ReLU -> Linear (weights kept in (out, in) layout) ---
    x = x_ref[...]                                         # (16, items*features)
    # x @ W1^T : contract last axes of both operands (NT form on the MXU).
    h = lax.dot_general(x, w1_ref[...], (((1,), (1,)), ((), ())),
                        preferred_element_type=jnp.float32) + b1_ref[...]
    h = jnp.maximum(h, 0.0)                                # ReLU
    y = lax.dot_general(h, w2_ref[...], (((1,), (1,)), ((), ())),
                        preferred_element_type=jnp.float32) + b2_ref[...]
    # y: (16, classes + 1) logits

    # ---- target = ((data @ weight).round().long() % classes) ---------------
    df = df_ref[...]                                       # (16, items)
    wb = wb_ref[...]                                       # (1, items)
    t_f = jnp.sum(df * wb, axis=-1, keepdims=True)         # (16, 1)
    t = jnp.round(t_f).astype(jnp.int32) % classes         # (16, 1), in [0, classes)
    # target = where(target >= min(step/add_class_every + 2, classes), 0, t+1)
    thr = thr_ref[0, 0]                                    # runtime SMEM scalar
    t = jnp.where(t.astype(jnp.float32) >= thr, 0, t + 1)  # (16, 1)

    # ---- cross entropy (mean over batch) ------------------------------------
    m = jnp.max(y, axis=-1, keepdims=True)
    lse = m + jnp.log(jnp.sum(jnp.exp(y - m), axis=-1, keepdims=True))  # (16,1)
    lane_ids = lax.broadcasted_iota(jnp.int32, y.shape, 1)              # (16,C+1)
    picked = jnp.sum(jnp.where(lane_ids == t, y, 0.0), axis=-1, keepdims=True)
    per_ex = lse - picked                                               # (16,1)
    loss = jnp.sum(per_ex, axis=0, keepdims=True) * (1.0 / BATCH)       # (1,1)
    loss_ref[0, 0] = loss[0, 0]


@functools.partial(jax.jit,
                   static_argnames=("classes", "items", "features", "hidden",
                                    "add_class_every"))
def model_forward(data, emb, w1, b1, w2, b2, weight_buf, step, *, classes,
                  items, features, hidden, add_class_every):
    """Replicates Model.forward() for a runtime `step`; returns scalar CE loss."""
    # Glue (gather/reshape/casts) — fused by XLA with the Pallas call.
    x_flat = emb[data].reshape(BATCH, items * features).astype(jnp.float32)
    data_f = data.astype(jnp.float32)                       # (16, items)
    wb = weight_buf.reshape(1, items).astype(jnp.float32)   # (1, items)
    b1_r = b1.reshape(1, hidden).astype(jnp.float32)
    b2_r = b2.reshape(1, classes + 1).astype(jnp.float32)

    # threshold = min(step / add_class_every + 2, classes) — runtime scalar,
    # passed through SMEM so `step` never forces a recompile.
    thr = jnp.minimum(jnp.asarray(step, jnp.float32) / add_class_every + 2.0,
                      jnp.float32(classes)).reshape(1, 1)

    kernel = functools.partial(_forward_kernel, classes=classes)
    smem = pl.BlockSpec(memory_space=pltpu.MemorySpace.SMEM)
    vmem = pl.BlockSpec(memory_space=pltpu.MemorySpace.VMEM)
    loss = pl.pallas_call(
        kernel,
        out_shape=jax.ShapeDtypeStruct((1, 1), jnp.float32),
        in_specs=[smem, vmem, vmem, vmem, vmem, vmem, vmem, vmem],
        out_specs=smem,
    )(thr, x_flat, data_f, wb,
      w1.astype(jnp.float32), b1_r, w2.astype(jnp.float32), b2_r)
    return loss[0, 0]


def _reference_forward(data, emb, w1, b1, w2, b2, weight_buf, step, *, classes,
                       items, features, add_class_every):
    x = emb[data].reshape(BATCH, items * features).astype(jnp.float32)
    h = jnp.maximum(x @ w1.T + b1, 0.0)
    y = h @ w2.T + b2
    t = (jnp.round(data.astype(jnp.float32) @ weight_buf.astype(jnp.float32))
         .astype(jnp.int32) % classes)
    thr = min(step / add_class_every + 2.0, float(classes))
    t = jnp.where(t.astype(jnp.float32) >= thr, 0, t + 1)
    m = jnp.max(y, axis=-1, keepdims=True)
    lse = m + jnp.log(jnp.sum(jnp.exp(y - m), axis=-1, keepdims=True))
    picked = jnp.take_along_axis(y, t[:, None], axis=-1)
    return jnp.mean(lse - picked)


if __name__ == "__main__":
    # Small, module-consistent shapes.
    classes, items, features, hidden = 8, 8, 4, 32
    add_class_every = 2

    key = jax.random.PRNGKey(0)
    k_emb, k_w1, k_b1, k_w2, k_b2, k_buf, k_data = jax.random.split(key, 7)

    # Deterministic synthetic parameters (shapes from Model.__init__).
    emb = jax.random.normal(k_emb, (classes, features), jnp.float32)
    w1 = jax.random.normal(k_w1, (hidden, items * features), jnp.float32) * 0.1
    b1 = jax.random.normal(k_b1, (hidden,), jnp.float32) * 0.1
    w2 = jax.random.normal(k_w2, (classes + 1, hidden), jnp.float32) * 0.1
    b2 = jax.random.normal(k_b2, (classes + 1,), jnp.float32) * 0.1
    weight_buf = jax.random.normal(k_buf, (items,), jnp.float32)

    # The "randint" data generated inside forward() — made deterministic here.
    data = jax.random.randint(k_data, (BATCH, items), 0, classes, jnp.int32)

    ok = True
    for step in (0, 5):  # different steps reuse the SAME compiled kernel
        loss = model_forward(data, emb, w1, b1, w2, b2, weight_buf,
                             jnp.asarray(step, jnp.int32),
                             classes=classes, items=items, features=features,
                             hidden=hidden, add_class_every=add_class_every)
        loss = jax.block_until_ready(loss)
        ref = _reference_forward(data, emb, w1, b1, w2, b2, weight_buf, step,
                                 classes=classes, items=items,
                                 features=features,
                                 add_class_every=add_class_every)
        ok = ok and bool(jnp.allclose(loss, ref, rtol=1e-5, atol=1e-5))

    assert ok, "kernel output does not match reference"
    print("KERNEL_OK")
</pallas_src>

<mosaic_0001>
module attributes {stable_mosaic.version = 11 : i64} {
  func.func @_forward_kernel(%arg0: memref<1x1xf32, #tpu.memory_space<smem>>, %arg1: memref<16x32xf32, #tpu.memory_space<vmem>>, %arg2: memref<16x8xf32, #tpu.memory_space<vmem>>, %arg3: memref<1x8xf32, #tpu.memory_space<vmem>>, %arg4: memref<32x32xf32, #tpu.memory_space<vmem>>, %arg5: memref<1x32xf32, #tpu.memory_space<vmem>>, %arg6: memref<9x32xf32, #tpu.memory_space<vmem>>, %arg7: memref<1x9xf32, #tpu.memory_space<vmem>>, %arg8: memref<1x1xf32, #tpu.memory_space<smem>>) attributes {dimension_semantics = [], scalar_prefetch = 0 : i64, scratch_operands = 0 : i64, tpu.core_type = #tpu.core_type<tc>} {
    %c0 = arith.constant 0 : index
    %c0_0 = arith.constant 0 : index
    %0 = vector.load %arg1[%c0, %c0_0] : memref<16x32xf32, #tpu.memory_space<vmem>>, vector<16x32xf32>
    %c0_1 = arith.constant 0 : index
    %c0_2 = arith.constant 0 : index
    %1 = vector.load %arg4[%c0_1, %c0_2] : memref<32x32xf32, #tpu.memory_space<vmem>>, vector<32x32xf32>
    %cst = arith.constant dense<0.000000e+00> : vector<16x32xf32>
    %2 = tpu.matmul %0, %1, %cst {dimension_numbers = #tpu.dot_dimension_numbers<[1], [1], [0], [0], [0, 0, 1, 0], [], []>} : vector<16x32xf32>, vector<32x32xf32>, vector<16x32xf32> -> vector<16x32xf32>
    %c0_3 = arith.constant 0 : index
    %c0_4 = arith.constant 0 : index
    %3 = vector.load %arg5[%c0_3, %c0_4] : memref<1x32xf32, #tpu.memory_space<vmem>>, vector<1x32xf32>
    %4 = vector.broadcast %3 : vector<1x32xf32> to vector<16x32xf32>
    %5 = arith.addf %2, %4 : vector<16x32xf32>
    %cst_5 = arith.constant 0.000000e+00 : f32
    %6 = vector.broadcast %cst_5 : f32 to vector<16x32xf32>
    %7 = arith.maximumf %5, %6 : vector<16x32xf32>
    %c0_6 = arith.constant 0 : index
    %c0_7 = arith.constant 0 : index
    %8 = vector.load %arg6[%c0_6, %c0_7] : memref<9x32xf32, #tpu.memory_space<vmem>>, vector<9x32xf32>
    %cst_8 = arith.constant dense<0.000000e+00> : vector<16x9xf32>
    %9 = tpu.matmul %7, %8, %cst_8 {dimension_numbers = #tpu.dot_dimension_numbers<[1], [1], [0], [0], [0, 0, 1, 0], [], []>} : vector<16x32xf32>, vector<9x32xf32>, vector<16x9xf32> -> vector<16x9xf32>
    %c0_9 = arith.constant 0 : index
    %c0_10 = arith.constant 0 : index
    %10 = vector.load %arg7[%c0_9, %c0_10] : memref<1x9xf32, #tpu.memory_space<vmem>>, vector<1x9xf32>
    %11 = vector.broadcast %10 : vector<1x9xf32> to vector<16x9xf32>
    %12 = arith.addf %9, %11 : vector<16x9xf32>
    %c0_11 = arith.constant 0 : index
    %c0_12 = arith.constant 0 : index
    %13 = vector.load %arg2[%c0_11, %c0_12] : memref<16x8xf32, #tpu.memory_space<vmem>>, vector<16x8xf32>
    %c0_13 = arith.constant 0 : index
    %c0_14 = arith.constant 0 : index
    %14 = vector.load %arg3[%c0_13, %c0_14] : memref<1x8xf32, #tpu.memory_space<vmem>>, vector<1x8xf32>
    %15 = vector.broadcast %14 : vector<1x8xf32> to vector<16x8xf32>
    %16 = arith.mulf %13, %15 : vector<16x8xf32>
    %cst_15 = arith.constant dense<0.000000e+00> : vector<16xf32>
    %17 = vector.multi_reduction <add>, %16, %cst_15 [1] : vector<16x8xf32> to vector<16xf32>
    %18 = vector.shape_cast %17 : vector<16xf32> to vector<16x1xf32>
    %19 = math.roundeven %18 : vector<16x1xf32>
    %20 = arith.fptosi %19 : vector<16x1xf32> to vector<16x1xi32>
    %c8_i32 = arith.constant 8 : i32
    %c0_i32 = arith.constant 0 : i32
    %21 = arith.cmpi eq, %c8_i32, %c0_i32 : i32
    %c1_i32 = arith.constant 1 : i32
    %22 = arith.select %21, %c1_i32, %c8_i32 : i32
    %23 = vector.broadcast %22 : i32 to vector<16x1xi32>
    %24 = arith.remsi %20, %23 : vector<16x1xi32>
    %c0_i32_16 = arith.constant 0 : i32
    %25 = vector.broadcast %c0_i32_16 : i32 to vector<16x1xi32>
    %26 = arith.cmpi ne, %24, %25 : vector<16x1xi32>
    %c0_i32_17 = arith.constant 0 : i32
    %27 = vector.broadcast %c0_i32_17 : i32 to vector<16x1xi32>
    %28 = arith.cmpi slt, %24, %27 : vector<16x1xi32>
    %c0_i32_18 = arith.constant 0 : i32
    %29 = arith.cmpi slt, %22, %c0_i32_18 : i32
    %30 = vector.broadcast %29 : i1 to vector<16x1xi1>
    %31 = vector.broadcast %30 : vector<16x1xi1> to vector<16x1xi1>
    %32 = arith.xori %28, %31 : vector<16x1xi1>
    %33 = arith.andi %32, %26 : vector<16x1xi1>
    %34 = vector.broadcast %22 : i32 to vector<16x1xi32>
    %35 = arith.addi %24, %34 : vector<16x1xi32>
    %36 = arith.select %33, %35, %24 : vector<16x1xi1>, vector<16x1xi32>
    %c0_19 = arith.constant 0 : index
    %c0_20 = arith.constant 0 : index
    %37 = memref.load %arg0[%c0_19, %c0_20] : memref<1x1xf32, #tpu.memory_space<smem>>
    %38 = arith.sitofp %36 : vector<16x1xi32> to vector<16x1xf32>
    %39 = vector.broadcast %37 : f32 to vector<16x1xf32>
    %40 = arith.cmpf oge, %38, %39 : vector<16x1xf32>
    %c1_i32_21 = arith.constant 1 : i32
    %41 = vector.broadcast %c1_i32_21 : i32 to vector<16x1xi32>
    %42 = arith.addi %36, %41 : vector<16x1xi32>
    %c0_i32_22 = arith.constant 0 : i32
    %43 = vector.broadcast %c0_i32_22 : i32 to vector<16x1xi32>
    %44 = arith.select %40, %43, %42 : vector<16x1xi1>, vector<16x1xi32>
    %cst_23 = arith.constant dense<0xFF800000> : vector<16xf32>
    %45 = vector.multi_reduction <maximumf>, %12, %cst_23 [1] : vector<16x9xf32> to vector<16xf32>
    %46 = vector.shape_cast %45 : vector<16xf32> to vector<16x1xf32>
    %47 = vector.broadcast %46 : vector<16x1xf32> to vector<16x9xf32>
    %48 = arith.subf %12, %47 : vector<16x9xf32>
    %49 = math.exp %48 : vector<16x9xf32>
    %cst_24 = arith.constant dense<0.000000e+00> : vector<16xf32>
    %50 = vector.multi_reduction <add>, %49, %cst_24 [1] : vector<16x9xf32> to vector<16xf32>
    %51 = vector.shape_cast %50 : vector<16xf32> to vector<16x1xf32>
    %52 = math.log %51 : vector<16x1xf32>
    %53 = arith.addf %46, %52 : vector<16x1xf32>
    %54 = tpu.iota {dimensions = array<i32: 1>} : vector<16x9xi32>
    %55 = vector.broadcast %44 : vector<16x1xi32> to vector<16x9xi32>
    %56 = arith.cmpi eq, %54, %55 : vector<16x9xi32>
    %cst_25 = arith.constant 0.000000e+00 : f32
    %57 = vector.broadcast %cst_25 : f32 to vector<16x9xf32>
    %58 = arith.select %56, %12, %57 : vector<16x9xi1>, vector<16x9xf32>
    %cst_26 = arith.constant dense<0.000000e+00> : vector<16xf32>
    %59 = vector.multi_reduction <add>, %58, %cst_26 [1] : vector<16x9xf32> to vector<16xf32>
    %60 = vector.shape_cast %59 : vector<16xf32> to vector<16x1xf32>
    %61 = arith.subf %53, %60 : vector<16x1xf32>
    %cst_27 = arith.constant dense<0.000000e+00> : vector<1xf32>
    %62 = vector.multi_reduction <add>, %61, %cst_27 [0] : vector<16x1xf32> to vector<1xf32>
    %63 = vector.shape_cast %62 : vector<1xf32> to vector<1x1xf32>
    %cst_28 = arith.constant 6.250000e-02 : f32
    %64 = vector.broadcast %cst_28 : f32 to vector<1x1xf32>
    %65 = arith.mulf %63, %64 : vector<1x1xf32>
    %66 = vector.extract %65[0, 0] : f32 from vector<1x1xf32>
    %c0_29 = arith.constant 0 : index
    %c0_30 = arith.constant 0 : index
    %67 = memref.load %arg8[%c0_29, %c0_30] : memref<1x1xf32, #tpu.memory_space<smem>>
    memref.store %66, %arg8[%c0_29, %c0_30] : memref<1x1xf32, #tpu.memory_space<smem>>
    return
  }
}

</mosaic_0001>

<bundles_post_ra>
// kernel: model_forward.1
= control target key start
LH: loop header
LB: loop body
LE: loop exit
PB: predicated region body
PF: predicated region fallthrough
CT: control target
= control target key end

     0   :  { %vm44_vm0 = vcmask 261120   ;;  %s560_s0 = inlined_call_operand.<no memory space> [shape: f32[1,1], index: 0, kind: input, shape index: {}]   ;;  %s561_s1 = inlined_call_operand.vmem [shape: f32[16,32], index: 1, kind: input, shape index: {}]   ;;  %s562_s2 = inlined_call_operand.vmem [shape: f32[16,8], index: 2, kind: input, shape index: {}]   ;;  %s563_s3 = inlined_call_operand.vmem [shape: f32[1,8], index: 3, kind: input, shape index: {}]   ;;  %s564_s4 = inlined_call_operand.vmem [shape: f32[32,32], index: 4, kind: input, shape index: {}]   ;;  %s565_s5 = inlined_call_operand.vmem [shape: f32[1,32], index: 5, kind: input, shape index: {}]   ;;  %s566_s6 = inlined_call_operand.vmem [shape: f32[9,32], index: 6, kind: input, shape index: {}]   ;;  %s567_s7 = inlined_call_operand.vmem [shape: f32[1,9], index: 7, kind: input, shape index: {}]   ;;  %s568_s8 = inlined_call_operand.hbm [shape: f32[1,1], index: 8, kind: output, shape index: {}]  }
   0x1   :  { %v33_v0 = vld [vmem:[%s564_s4] sm:$0xff]  ;;  %v34_v1 = vld [vmem:[%s564_s4 + $0x8] sm:$0xff]  ;;  %v35_v2 = vld [vmem:[%s564_s4 + $0x10] sm:$0xff] }
   0x2   :  { %v396_v3 = vpack.c.bf16 %v34_v1, %v33_v0  ;;  %vm397_vm1 = vmpackc.low %vm44_vm0, %vm44_vm0  ;;  %v36_v4 = vld [vmem:[%s564_s4 + $0x18] sm:$0xff]  ;;  %v31_v5 = vld [vmem:[%s561_s1] sm:$0xff] }
   0x3   :  { %v402_v6 = vpack.c.bf16 %v36_v4, %v35_v2  ;;  %386 = vmatprep.mubr.msk.f32.mxu0 %vm44_vm0, %v31_v5  ;;  %v140_v7 = vld [vmem:[%s566_s6] sm:$0xff]  ;;  %v141_v8 = vld [vmem:[%s566_s6 + $0x8] sm:$0x1] }
   0x4   :  { %398 = vmatprep.subr.msk.bf16.mxu0 %vm397_vm1, %v396_v3  ;;  %v408_v9 = vpack.c.bf16 %v141_v8, %v140_v7 }
   0x5   :  { %14 = vsyncpa [#allocation4], 0  ;;  %401 = vmatpush3.bf16.xpose.msk.msra.mxu0 %vm397_vm1, %v396_v3  ;;  %v32_v10 = vld [vmem:[%s561_s1 + $0x8] sm:$0xff]  ;;  %v236_v11 = vld [vmem:[%s562_s2] sm:$0xff]  ;;  %vm247_vm2 = vcmask 64512   ;;  %vm290_vm3 = vcmask 72704   ;;  %v283_v55 = vstv %s560_s0  ;;  %v315_v57 = vlaneseq }
   0x6   :  { %404 = vmatprep.subr.msk.bf16.mxu0 %vm397_vm1, %v402_v6  ;;  %410 = vmatprep.subr.msk.bf16.mxu1 %vm397_vm1, %v408_v9  ;;  %v365_v12 = vld [vmem:[%s563_s3] ss:$0 sm:$0xff]  ;;  %v237_v13 = vld [vmem:[%s562_s2 + $0x8] sm:$0xff]  ;;  %s431_s28 = scalar_lea.hbm %s568_s8, 16 }
   0x7   :  { %413 = vmatpush3.bf16.xpose.msk.msra.mxu1 %vm397_vm1, %v408_v9  ;;  %v245_v14 = vmul.f32 %v365_v12, %v236_v11  ;;  %v246_v15 = vmul.f32 %v365_v12, %v237_v13  ;;  %v353_v18 = vld [vmem:[%s565_s5] ss:$0 sm:$0xff]  ;;  %v316_v61 = vand.u32 127, %v315_v57  ;;  %p432_p0 = scmp.ne.s32.totalorder %s568_s8, %s431_s28  ;;  %p435_p1 = scmp.lt.u32.totalorder %s431_s28, %s568_s8 }
   0x8   :  { %v360_v25 = vld [vmem:[%s567_s7] ss:$0 sm:$0xff] }
   0x9   :  { %v248_v16 = vsel %vm247_vm2, %v245_v14, 0.0  ;;  %v251_v17 = vsel %vm247_vm2, %v246_v15, 0.0  ;;  %p437_p2 = pnand %p435_p1, %p432_p0 }
   0xa   :  { %249 = vadd.xlane.f32.xlu1 %v248_v16 }
   0xd   :  { %407 = vmatpush3.bf16.xpose.msk.msra.mxu0 %vm397_vm1, %v402_v6 }
   0xe   :  { %252 = vadd.xlane.f32.xlu1 %v251_v17 }
  0x14   :  { %387 = vmatmul.mubr.msk.f32.vlgmr.msra.gmra.mrb[0].mxu0 %vm44_vm0, %v32_v10 }
  0x97   :  { %v250_v32 = vpop.xlane.xlu1 %249 }
  0x98   :  { %v416_v33 = vcvt.f32.s32 %v250_v32 }
  0x9a   :  { %v257_v35 = vsub.s32 0, %v416_v33  ;;  %vm256_vm4 = vcmp.lt.s32.totalorder %v416_v33, 0 }
  0x9b   :  { %v253_v34 = vpop.xlane.xlu1 %252 }
  0x9c   :  { %v419_v36 = vcvt.f32.s32 %v253_v34  ;;  %v366_v37 = vmin.u32 %v416_v33, %v257_v35 }
  0x9e   :  { %v264_v38 = vsub.s32 0, %v419_v36  ;;  %v260_v39 = vand.u32 7, %v366_v37  ;;  %vm263_vm5 = vcmp.lt.s32.totalorder %v419_v36, 0 }
  0xa0   :  { %v367_v40 = vmin.u32 %v419_v36, %v264_v38  ;;  %v261_v41 = vsub.s32 0, %v260_v39 }
  0xa2   :  { %v267_v42 = vand.u32 7, %v367_v40  ;;  %v262_v43 = vsel %vm256_vm4, %v261_v41, %v260_v39 }
  0xa3   :  { %vm270_vm6 = vcmp.ne.s32.totalorder %v262_v43, 0  ;;  %vm272_vm7 = vcmp.lt.s32.totalorder %v262_v43, 0  ;;  %v276_v46 = vadd.s32 8, %v262_v43 }
  0xa4   :  { %v268_v44 = vsub.s32 0, %v267_v42  ;;  %vm274_vm8 = vmand %vm272_vm7, %vm270_vm6 }
  0xa5   :  { %v278_v49 = vsel %vm274_vm8, %v276_v46, %v262_v43 }
  0xa6   :  { %v269_v45 = vsel %vm263_vm5, %v268_v44, %v267_v42  ;;  %v281_v53 = vcvt.s32.f32 %v278_v49  ;;  %v286_v59 = vadd.s32 1, %v278_v49 }
  0xa7   :  { %vm271_vm9 = vcmp.ne.s32.totalorder %v269_v45, 0  ;;  %vm273_vm10 = vcmp.lt.s32.totalorder %v269_v45, 0  ;;  %v277_v50 = vadd.s32 8, %v269_v45 }
  0xa8   :  { %vm275_vm11 = vmand %vm273_vm10, %vm271_vm9  ;;  %vm284_vm12 = vcmp.ge.f32.partialorder %v281_v53, %v283_v55 }
  0xa9   :  { %v279_v56 = vsel %vm275_vm11, %v277_v50, %v269_v45  ;;  %v288_v62 = vsel %vm284_vm12, 0, %v286_v59 }
  0xaa   :  { %v282_v60 = vcvt.s32.f32 %v279_v56  ;;  %v287_v63 = vadd.s32 1, %v279_v56  ;;  %vm317_vm14 = vcmp.eq.s32.totalorder %v316_v61, %v288_v62 }
  0xac   :  { %vm285_vm13 = vcmp.ge.f32.partialorder %v282_v60, %v283_v55 }
  0xad   :  { %v289_v1 = vsel %vm285_vm13, 0, %v287_v63 }
  0xae   :  { %vm318_vm15 = vcmp.eq.s32.totalorder %v316_v61, %v289_v1 }
  0xe7   :  { %v388_v19 = vpop.f32.mrb[0].mxu0 }
  0xe8   :  { %v135_v20 = vadd.f32 %v388_v19, %v353_v18  ;;  %v129_v21 = vpop.f32.mrb[1].mxu0 }
  0xe9   :  { %v130_v22 = vadd.f32 %v353_v18, %v129_v21 }
  0xea   :  { %v139_v24 = vmax.f32 %v135_v20, 0.0 }
  0xeb   :  { %v138_v23 = vmax.f32 %v130_v22, 0.0 }
  0xed   :  { %393 = vmatprep.mubr.msk.f32.mxu1 %vm44_vm0, %v138_v23 }
  0xee   :  { %394 = vmatmul.mubr.msk.f32.vlgmr.msra.gmra.mrb[0].mxu1 %vm44_vm0, %v139_v24 }
 0x1c1   :  { %v395_v26 = vpop.f32.mrb[0].mxu1 }
 0x1c2   :  { %v227_v27 = vpop.f32.mrb[1].mxu1  ;;  %v534_v29 = vadd.f32 %v395_v26, %v360_v25 }
 0x1c3   :  { %v228_v28 = vadd.f32 %v360_v25, %v227_v27 }
 0x1c4   :  { %v294_v31 = vsel %vm290_vm3, %v534_v29, -inf  ;;  %v320_v7 = vsel %vm318_vm15, %v534_v29, 0.0 }
 0x1c5   :  { %v291_v30 = vsel %vm290_vm3, %v228_v28, -inf  ;;  %v319_v3 = vsel %vm317_vm14, %v228_v28, 0.0  ;;  %v324_v8 = vsel %vm290_vm3, %v320_v7, 0.0 }
 0x1c6   :  { %292 = vmax.xlane.f32.xlu0 %v291_v30  ;;  %v321_v5 = vsel %vm290_vm3, %v319_v3, 0.0 }
 0x1ca   :  { %295 = vmax.xlane.f32.xlu0 %v294_v31 }
 0x253   :  { %v293_v47 = vpop.xlane.xlu0 %292 }
 0x254   :  { %v297_v48 = vsub.f32 %v228_v28, %v293_v47 }
 0x256   :  { %v299_v51 = vmul.f32 1.442695, %v297_v48 }
 0x257   :  { %v296_v52 = vpop.xlane.xlu0 %295 }
 0x258   :  { %423 = vpow2.f32 %v299_v51  ;;  %v298_v54 = vsub.f32 %v534_v29, %v296_v52 }
 0x25a   :  { %v301_v58 = vmul.f32 1.442695, %v298_v54 }
 0x25c   :  { %425 = vpow2.f32 %v301_v58 }
 0x262   :  { %v424_v0 = vpop.eup %423 }
 0x263   :  { %v303_v2 = vsel %vm290_vm3, %v424_v0, 0.0 }
 0x264   :  { %304 = vadd.xlane.f32.xlu0 %v303_v2 }
 0x266   :  { %v426_v4 = vpop.eup %425 }
 0x267   :  { %v306_v6 = vsel %vm290_vm3, %v426_v4, 0.0 }
 0x268   :  { %322 = vadd.xlane.f32.xlu0 %v321_v5  ;;  %307 = vadd.xlane.f32.xlu1 %v306_v6 }
 0x26c   :  { %325 = vadd.xlane.f32.xlu1 %v324_v8 }
 0x2f1   :  { %v305_v9 = vpop.xlane.xlu0 %304 }
 0x2f2   :  { %427 = vlog2.f32 %v305_v9 }
 0x2f5   :  { %v308_v10 = vpop.xlane.xlu1 %307  ;;  %v323_v17 = vpop.xlane.xlu0 %322 }
 0x2f6   :  { %429 = vlog2.f32 %v308_v10 }
 0x2f9   :  { %v326_v18 = vpop.xlane.xlu1 %325 }
 0x2fc   :  { %v428_v11 = vpop.eup %427 }
 0x2fd   :  { %v310_v12 = vmul.f32 0.6931472, %v428_v11 }
 0x2ff   :  { %v313_v15 = vadd.f32 %v310_v12, %v293_v47 }
 0x300   :  { %v430_v13 = vpop.eup %429 }
 0x301   :  { %v312_v14 = vmul.f32 0.6931472, %v430_v13  ;;  %v327_v19 = vsub.f32 %v313_v15, %v323_v17 }
 0x303   :  { %v314_v16 = vadd.f32 %v312_v14, %v296_v52 }
 0x305   :  { %v328_v20 = vsub.f32 %v314_v16, %v326_v18 }
 0x307   :  { %v329_v21 = vadd.f32 %v328_v20, %v327_v19 }
 0x309   :  { %v330_v22 = vrot.slane %v329_v21, 4 }
 0x30b   :  { %v331_v23 = vadd.f32 %v330_v22, %v329_v21 }
 0x30d   :  { %v332_v24 = vrot.slane %v331_v23, 2 }
 0x30f   :  { %v333_v25 = vadd.f32 %v332_v24, %v331_v23 }
 0x311   :  { %v334_v26 = vrot.slane %v333_v25, 1 }
 0x313   :  { %v335_v27 = vadd.f32 %v334_v26, %v333_v25 }
 0x315   :  { %v336_v28 = vmul.f32 0.0625, %v335_v27 }
 0x317   :  { %420 = vpush %v336_v28 }
 0x348   :  { %s421_s0 = spop %420 }
 0x349   :  { %339 = sst [smem:[#allocation3]] %s421_s0 }
 0x34a   :  { %440 = shalt.err (!%p437_p2)
}
 0x34b   :  { %s443_s11 = smov [#allocation3]  }
 0x34c   :  { %347 = dma.smem_to_hbm %s443_s11, 16, %s568_s8, [#allocation4]  }
 0x34d   :  { %441 = dma.done.wait [#allocation4], 16  }
 0x34e   :  { %442 = vsyncadd [#allocation4], 4294967280 }
 0x34f   :  { %351 = sfence }
 0x350   :  { %352 = vsyncpa [#allocation4], 1 }

</bundles_post_ra>
